<compile_context>
chip_gen: v5e
topology: v5e:2x2
jax: 0.10.0
libtpu: 0.0.40
codegen_flags: <defaults>
</compile_context>

<pallas_src>
import jax
import jax.numpy as jnp
from jax.experimental import pallas as pl
from jax.experimental.pallas import tpu as pltpu

LANE = 128  # lane width: the batch dimension lives on lanes
SUB = 8     # sublane width: feature dims are zero-padded to a multiple of 8


def _round_up(n, m):
    return ((n + m - 1) // m) * m


def _pad2(a, rows, cols):
    """Zero-pad a 2-D array up to (rows, cols)."""
    return jnp.pad(a, ((0, rows - a.shape[0]), (0, cols - a.shape[1])))


def mlp_kernel(xt_ref, w1_ref, b1_ref, w2_ref, b2_ref, w3_ref, b3_ref, ot_ref):
    """Feature-major MLP: every operand is (features, batch_tile)."""
    xt = xt_ref[...]                                                   # (Ip, TB)

    # fc1 + ReLU  (zero-padded weight cols / bias rows keep padded rows == 0)
    h1 = jnp.dot(w1_ref[...], xt, preferred_element_type=jnp.float32)  # (H1p, TB)
    h1 = jnp.maximum(h1 + b1_ref[...], 0.0)

    # fc2 + ReLU
    h2 = jnp.dot(w2_ref[...], h1, preferred_element_type=jnp.float32)  # (H2p, TB)
    h2 = jnp.maximum(h2 + b2_ref[...], 0.0)

    # out (no activation) — lane-dense (Op, TB) store, real data in [:O, :]
    y = jnp.dot(w3_ref[...], h2, preferred_element_type=jnp.float32)   # (Op, TB)
    ot_ref[...] = (y + b3_ref[...]).astype(ot_ref.dtype)


def make_mlp_forward(params, *, tb_max=8192):
    """Prepare (once) feature-major padded params and return a jitted forward."""
    w1, b1 = params["fc1_w"], params["fc1_b"]        # (H1, I), (H1,)
    w2, b2 = params["fc2_w"], params["fc2_b"]        # (H2, H1), (H2,)
    w3, b3 = params["out_w"], params["out_b"]        # (O, H2), (O,)

    I, H1 = w1.shape[1], w1.shape[0]
    H2, O = w2.shape[0], w3.shape[0]
    Ip, H1p = _round_up(I, SUB), _round_up(H1, SUB)
    H2p, Op = _round_up(H2, SUB), _round_up(O, SUB)

    f32 = jnp.float32
    # Hoisted out of the per-call path: sublane-padded, feature-major params.
    w1p = _pad2(jnp.asarray(w1, f32), H1p, Ip)            # (H1p, Ip)
    w2p = _pad2(jnp.asarray(w2, f32), H2p, H1p)           # (H2p, H1p)
    w3p = _pad2(jnp.asarray(w3, f32), Op, H2p)            # (Op, H2p)
    b1p = _pad2(jnp.asarray(b1, f32)[:, None], H1p, 1)    # (H1p, 1)
    b2p = _pad2(jnp.asarray(b2, f32)[:, None], H2p, 1)    # (H2p, 1)
    b3p = _pad2(jnp.asarray(b3, f32)[:, None], Op, 1)     # (Op, 1)

    @jax.jit
    def forward(x):
        B = x.shape[0]
        assert x.shape[1] == I, f"expected input size {I}, got {x.shape[1]}"

        # Batch tile: multiple of 128 lanes, capped at tb_max, and kept at
        # >= 2 grid steps when possible so the parallel batch axis can shard
        # across both TensorCores on v7x.
        b_lanes = _round_up(B, LANE)
        if b_lanes >= 2 * LANE:
            TB = min(tb_max, _round_up(pl.cdiv(b_lanes, 2), LANE))
        else:
            TB = b_lanes
        Bp = _round_up(B, TB)

        # Feature-major input (Ip, Bp): batch on lanes, features zero-padded
        # to 8 sublanes only — no 128-lane padding of the batch-scaled data.
        xt = _pad2(jnp.asarray(x, f32), Bp, Ip).T          # (Ip, Bp)

        grid = (Bp // TB,)
        resident = lambda shape: pl.BlockSpec(shape, lambda i: (0, 0))

        # Advisory cost: the flops / bytes the kernel actually touches.
        flops = 2 * Bp * (Ip * H1p + H1p * H2p + H2p * Op)
        bytes_accessed = 4 * (Bp * (Ip + Op)
                              + Ip * H1p + H1p * H2p + H2p * Op
                              + H1p + H2p + Op)

        out_t = pl.pallas_call(
            mlp_kernel,
            out_shape=jax.ShapeDtypeStruct((Op, Bp), f32),
            grid=grid,
            in_specs=[
                pl.BlockSpec((Ip, TB), lambda i: (0, i)),   # x tile (streams)
                resident((H1p, Ip)), resident((H1p, 1)),    # fc1 (VMEM-resident)
                resident((H2p, H1p)), resident((H2p, 1)),   # fc2
                resident((Op, H2p)), resident((Op, 1)),     # out
            ],
            out_specs=pl.BlockSpec((Op, TB), lambda i: (0, i)),
            compiler_params=pltpu.CompilerParams(
                dimension_semantics=("parallel",),          # shard tiles over TCs
            ),
            cost_estimate=pl.CostEstimate(
                flops=flops, transcendentals=0, bytes_accessed=bytes_accessed),
        )(xt, w1p, b1p, w2p, b2p, w3p, b3p)

        return out_t[:O, :B].T                              # (B, O)

    return forward


def init_params(key, input_size=4, hidden1_size=8, hidden2_size=16, output_size=3):
    """Deterministic init mimicking nn.Linear's U(-1/sqrt(fan_in), 1/sqrt(fan_in))."""
    ks = jax.random.split(key, 6)

    def uniform(k, shape, fan_in):
        bound = 1.0 / jnp.sqrt(fan_in)
        return jax.random.uniform(k, shape, jnp.float32, -bound, bound)

    return {
        "fc1_w": uniform(ks[0], (hidden1_size, input_size), input_size),
        "fc1_b": uniform(ks[1], (hidden1_size,), input_size),
        "fc2_w": uniform(ks[2], (hidden2_size, hidden1_size), hidden1_size),
        "fc2_b": uniform(ks[3], (hidden2_size,), hidden1_size),
        "out_w": uniform(ks[4], (output_size, hidden2_size), hidden2_size),
        "out_b": uniform(ks[5], (output_size,), hidden2_size),
    }


def mlp_reference(x, p):
    h1 = jnp.maximum(x @ p["fc1_w"].T + p["fc1_b"], 0.0)
    h2 = jnp.maximum(h1 @ p["fc2_w"].T + p["fc2_b"], 0.0)
    return h2 @ p["out_w"].T + p["out_b"]


if __name__ == "__main__":
    key = jax.random.PRNGKey(0)
    k_params, k_x = jax.random.split(key)

    params = init_params(k_params)
    x = jax.random.normal(k_x, (8, 4), dtype=jnp.float32)   # batch=8, input_size=4

    forward = make_mlp_forward(params)
    out = jax.block_until_ready(forward(x))

    ref = mlp_reference(x, params)
    assert out.shape == (8, 3), f"bad shape {out.shape}"
    assert jnp.allclose(out, ref, atol=1e-5, rtol=1e-5), "mismatch vs reference"

    print("KERNEL_OK")
</pallas_src>

<mosaic_0001>
module attributes {stable_mosaic.version = 11 : i64} {
  func.func @mlp_kernel(%arg0: i32, %arg1: memref<8x128xf32, #tpu.memory_space<vmem>>, %arg2: memref<8x8xf32, #tpu.memory_space<vmem>>, %arg3: memref<8x1xf32, #tpu.memory_space<vmem>>, %arg4: memref<16x8xf32, #tpu.memory_space<vmem>>, %arg5: memref<16x1xf32, #tpu.memory_space<vmem>>, %arg6: memref<8x16xf32, #tpu.memory_space<vmem>>, %arg7: memref<8x1xf32, #tpu.memory_space<vmem>>, %arg8: memref<8x128xf32, #tpu.memory_space<vmem>>) attributes {dimension_semantics = [#tpu.dimension_semantics<parallel>], iteration_bounds = array<i64: 1>, scalar_prefetch = 0 : i64, scratch_operands = 0 : i64, tpu.core_type = #tpu.core_type<tc>, window_params = [{transform_indices = @transform_0, window_bounds = array<i64: 8, 128>}, {pipeline_mode = #tpu.pipeline_mode<synchronous>, transform_indices = @transform_1, window_bounds = array<i64: 8, 8>}, {pipeline_mode = #tpu.pipeline_mode<synchronous>, transform_indices = @transform_2, window_bounds = array<i64: 8, 1>}, {pipeline_mode = #tpu.pipeline_mode<synchronous>, transform_indices = @transform_3, window_bounds = array<i64: 16, 8>}, {pipeline_mode = #tpu.pipeline_mode<synchronous>, transform_indices = @transform_4, window_bounds = array<i64: 16, 1>}, {pipeline_mode = #tpu.pipeline_mode<synchronous>, transform_indices = @transform_5, window_bounds = array<i64: 8, 16>}, {pipeline_mode = #tpu.pipeline_mode<synchronous>, transform_indices = @transform_6, window_bounds = array<i64: 8, 1>}, {transform_indices = @transform_7, window_bounds = array<i64: 8, 128>}]} {
    %c0 = arith.constant 0 : index
    %c0_0 = arith.constant 0 : index
    %0 = vector.load %arg1[%c0, %c0_0] : memref<8x128xf32, #tpu.memory_space<vmem>>, vector<8x128xf32>
    %c0_1 = arith.constant 0 : index
    %c0_2 = arith.constant 0 : index
    %1 = vector.load %arg2[%c0_1, %c0_2] : memref<8x8xf32, #tpu.memory_space<vmem>>, vector<8x8xf32>
    %cst = arith.constant dense<0.000000e+00> : vector<8x128xf32>
    %2 = tpu.matmul %1, %0, %cst {dimension_numbers = #tpu.dot_dimension_numbers<[1], [0], [0], [1], [0, 0, 1, 1], [], []>} : vector<8x8xf32>, vector<8x128xf32>, vector<8x128xf32> -> vector<8x128xf32>
    %c0_3 = arith.constant 0 : index
    %c0_4 = arith.constant 0 : index
    %3 = vector.load %arg3[%c0_3, %c0_4] : memref<8x1xf32, #tpu.memory_space<vmem>>, vector<8x1xf32>
    %4 = vector.broadcast %3 : vector<8x1xf32> to vector<8x128xf32>
    %5 = arith.addf %2, %4 : vector<8x128xf32>
    %cst_5 = arith.constant 0.000000e+00 : f32
    %6 = vector.broadcast %cst_5 : f32 to vector<8x128xf32>
    %7 = arith.maximumf %5, %6 : vector<8x128xf32>
    %c0_6 = arith.constant 0 : index
    %c0_7 = arith.constant 0 : index
    %8 = vector.load %arg4[%c0_6, %c0_7] : memref<16x8xf32, #tpu.memory_space<vmem>>, vector<16x8xf32>
    %cst_8 = arith.constant dense<0.000000e+00> : vector<16x128xf32>
    %9 = tpu.matmul %8, %7, %cst_8 {dimension_numbers = #tpu.dot_dimension_numbers<[1], [0], [0], [1], [0, 0, 1, 1], [], []>} : vector<16x8xf32>, vector<8x128xf32>, vector<16x128xf32> -> vector<16x128xf32>
    %c0_9 = arith.constant 0 : index
    %c0_10 = arith.constant 0 : index
    %10 = vector.load %arg5[%c0_9, %c0_10] : memref<16x1xf32, #tpu.memory_space<vmem>>, vector<16x1xf32>
    %11 = vector.broadcast %10 : vector<16x1xf32> to vector<16x128xf32>
    %12 = arith.addf %9, %11 : vector<16x128xf32>
    %cst_11 = arith.constant 0.000000e+00 : f32
    %13 = vector.broadcast %cst_11 : f32 to vector<16x128xf32>
    %14 = arith.maximumf %12, %13 : vector<16x128xf32>
    %c0_12 = arith.constant 0 : index
    %c0_13 = arith.constant 0 : index
    %15 = vector.load %arg6[%c0_12, %c0_13] : memref<8x16xf32, #tpu.memory_space<vmem>>, vector<8x16xf32>
    %cst_14 = arith.constant dense<0.000000e+00> : vector<8x128xf32>
    %16 = tpu.matmul %15, %14, %cst_14 {dimension_numbers = #tpu.dot_dimension_numbers<[1], [0], [0], [1], [0, 0, 1, 1], [], []>} : vector<8x16xf32>, vector<16x128xf32>, vector<8x128xf32> -> vector<8x128xf32>
    %c0_15 = arith.constant 0 : index
    %c0_16 = arith.constant 0 : index
    %17 = vector.load %arg7[%c0_15, %c0_16] : memref<8x1xf32, #tpu.memory_space<vmem>>, vector<8x1xf32>
    %18 = vector.broadcast %17 : vector<8x1xf32> to vector<8x128xf32>
    %19 = arith.addf %16, %18 : vector<8x128xf32>
    %c0_17 = arith.constant 0 : index
    %c0_18 = arith.constant 0 : index
    %20 = vector.load %arg8[%c0_17, %c0_18] : memref<8x128xf32, #tpu.memory_space<vmem>>, vector<8x128xf32>
    tpu.vector_store %arg8[%c0_17, %c0_18], %19 {strides = array<i32>} : memref<8x128xf32, #tpu.memory_space<vmem>>, vector<8x128xf32>,
    return
  }
  func.func @transform_0(%arg0: i32) -> (i32, i32) {
    %c0_i32 = arith.constant 0 : i32
    %c0_i32_0 = arith.constant 0 : i32
    return %c0_i32, %arg0 : i32, i32
  }
  func.func @transform_1(%arg0: i32) -> (i32, i32) {
    %c0_i32 = arith.constant 0 : i32
    %c0_i32_0 = arith.constant 0 : i32
    %c0_i32_1 = arith.constant 0 : i32
    return %c0_i32, %c0_i32_0 : i32, i32
  }
  func.func @transform_2(%arg0: i32) -> (i32, i32) {
    %c0_i32 = arith.constant 0 : i32
    %c0_i32_0 = arith.constant 0 : i32
    %c0_i32_1 = arith.constant 0 : i32
    return %c0_i32, %c0_i32_0 : i32, i32
  }
  func.func @transform_3(%arg0: i32) -> (i32, i32) {
    %c0_i32 = arith.constant 0 : i32
    %c0_i32_0 = arith.constant 0 : i32
    %c0_i32_1 = arith.constant 0 : i32
    return %c0_i32, %c0_i32_0 : i32, i32
  }
  func.func @transform_4(%arg0: i32) -> (i32, i32) {
    %c0_i32 = arith.constant 0 : i32
    %c0_i32_0 = arith.constant 0 : i32
    %c0_i32_1 = arith.constant 0 : i32
    return %c0_i32, %c0_i32_0 : i32, i32
  }
  func.func @transform_5(%arg0: i32) -> (i32, i32) {
    %c0_i32 = arith.constant 0 : i32
    %c0_i32_0 = arith.constant 0 : i32
    %c0_i32_1 = arith.constant 0 : i32
    return %c0_i32, %c0_i32_0 : i32, i32
  }
  func.func @transform_6(%arg0: i32) -> (i32, i32) {
    %c0_i32 = arith.constant 0 : i32
    %c0_i32_0 = arith.constant 0 : i32
    %c0_i32_1 = arith.constant 0 : i32
    return %c0_i32, %c0_i32_0 : i32, i32
  }
  func.func @transform_7(%arg0: i32) -> (i32, i32) {
    %c0_i32 = arith.constant 0 : i32
    %c0_i32_0 = arith.constant 0 : i32
    return %c0_i32, %arg0 : i32, i32
  }
}

</mosaic_0001>

<bundles_post_ra>
// kernel: forward.1
= control target key start
LH: loop header
LB: loop body
LE: loop exit
PB: predicated region body
PF: predicated region fallthrough
CT: control target
= control target key end

     0   :  { %12 = vsyncpa [#allocation3], 0  ;;  %s392_s0 = inlined_call_operand.vmem [shape: f32[8,128], index: 0, kind: input, shape index: {}]   ;;  %s393_s1 = inlined_call_operand.hbm [shape: f32[8,8], index: 1, kind: input, shape index: {}]   ;;  %s394_s2 = inlined_call_operand.hbm [shape: f32[8,1], index: 2, kind: input, shape index: {}]   ;;  %s395_s3 = inlined_call_operand.hbm [shape: f32[16,8], index: 3, kind: input, shape index: {}]   ;;  %s396_s4 = inlined_call_operand.hbm [shape: f32[16,1], index: 4, kind: input, shape index: {}]   ;;  %s397_s5 = inlined_call_operand.vmem [shape: f32[8,16], index: 5, kind: input, shape index: {}]   ;;  %s398_s6 = inlined_call_operand.vmem [shape: f32[8,1], index: 6, kind: input, shape index: {}]   ;;  %s399_s7 = inlined_call_operand.vmem [shape: f32[8,128], index: 7, kind: output, shape index: {}]  }
   0x1   :  { %13 = vsyncpa [#allocation5], 0  ;;  %s33_s26 = sshll.u32 %s394_s2, 4  ;;  %s34_s26 = int_to_ptr.hbm [resolvable:$true] %s33_s26 }
   0x2   :  { %14 = vsyncpa [#allocation8], 0  ;;  %s318_s27 = smov [#allocation4]   ;;  %s22_s8 = sshll.u32 %s393_s1, 4  ;;  %s23_s8 = int_to_ptr.hbm [resolvable:$true] %s22_s8 }
   0x3   :  { %s35_s28 = sshll.u32 %s318_s27, 4  ;;  %s319_s9 = smov [#allocation2]   ;;  %s36_s28 = int_to_ptr.vmem [resolvable:$true] %s35_s28 }
   0x4   :  { %38 = dma.hbm_to_vmem [thread:$0]  %s34_s26, 128, %s36_s28, [#allocation5]  }
   0x5   :  { %s24_s10 = sshll.u32 %s319_s9, 4  ;;  %s43_s13 = sshll.u32 %s395_s3, 4  ;;  %s25_s10 = int_to_ptr.vmem [resolvable:$true] %s24_s10  ;;  %s44_s13 = int_to_ptr.hbm [resolvable:$true] %s43_s13 }
   0x6   :  { %27 = dma.hbm_to_vmem [thread:$0]  %s23_s8, 128, %s25_s10, [#allocation3]  }
   0x7   :  { %s320_s2 = smov [#allocation6]   ;;  %s56_s17 = sshll.u32 %s396_s4, 4  ;;  %s57_s17 = int_to_ptr.hbm [resolvable:$true] %s56_s17 }
   0x8   :  { %s45_s14 = sshll.u32 %s320_s2, 4  ;;  %s321_s18 = smov 128   ;;  %s46_s14 = int_to_ptr.vmem [resolvable:$true] %s45_s14 }
   0x9   :  { %s322_s1 = smov 8   ;;  %s323_s19 = smov [#allocation7]  }
   0xa   :  { %51 = dma.hbm_to_vmem [thread:$0]  %s44_s13, 256, %s46_s14, [#allocation5], %s321_s18, %s321_s18, %s322_s1  }
   0xb   :  { %s58_s20 = sshll.u32 %s323_s19, 4  ;;  %s59_s20 = int_to_ptr.vmem [resolvable:$true] %s58_s20 }
   0xc   :  { %64 = dma.hbm_to_vmem [thread:$0]  %s57_s17, 256, %s59_s20, [#allocation8], %s321_s18, %s321_s18, %s322_s1  }
   0xd   :  { %312 = dma.done.wait [#allocation3], 128  }
   0xe   :  { %313 = vsyncadd [#allocation3], 4294967168 }
   0xf   :  { %314 = dma.done.wait [#allocation5], 384  }
  0x10   :  { %315 = vsyncadd [#allocation5], 4294966912 }
  0x11   :  { %316 = dma.done.wait [#allocation8], 256  }
  0x12   :  { %317 = vsyncadd [#allocation8], 4294967040  ;;  %v324_v0 = vmov 0   ;;  %vm93_vm0 = vcmask 64512   ;;  %v85_v1 = vld [vmem:[%s392_s0] sm:$0xff]  ;;  %v87_v3 = vld [vmem:[#allocation4] sm:$0xff] }
  0x13   :  { %214 = vset.pattern.permute.xlu0 %v324_v0  ;;  %215 = vset.pattern.permute.xlu1 %v324_v0  ;;  %v86_v2 = vld [vmem:[#allocation2] sm:$0xff]  ;;  %v121_v4 = vld [vmem:[#allocation7 + $0x8] sm:$0xff]  ;;  %v119_v11 = vld [vmem:[#allocation6 + $0x8] sm:$0xff]  ;;  %vm170_vm1 = vcmask 130048  }
  0x14   :  { %112 = vmatpush.msra.mxu0 %v85_v1  ;;  %90 = vperm.xlu0 %214, %v87_v3   ;;  %v120_v5 = vld [vmem:[#allocation7] sm:$0xff]  ;;  %v118_v12 = vld [vmem:[#allocation6] sm:$0xff] }
  0x15   :  { %202 = vmatmul.msk.f32.vlgmr.msra.gmra.mxu0 %vm93_vm0, %v86_v2  ;;  %124 = vperm.xlu1 %215, %v120_v5   ;;  %v164_v6 = vld [vmem:[%s398_s6] sm:$0xff] }
  0x16   :  { %v163_v21 = vld [vmem:[%s397_s5] sm:$0xff] }
  0x1c   :  { %129 = vperm.xlu0 %214, %v121_v4  }
  0x1d   :  { %167 = vperm.xlu1 %215, %v164_v6  }
  0x86   :  { %v91_v7 = vpop.permute.xlu0 %90 }
  0x87   :  { %v125_v14 = vpop.permute.xlu1 %124 }
  0x8e   :  { %v130_v16 = vpop.permute.xlu0 %129 }
  0x8f   :  { %v168_v22 = vpop.permute.xlu1 %167 }
  0x92   :  { %v114_v8 = vpop.f32.mrf.mxu0 }
  0x93   :  { %v115_v9 = vadd.f32 %v114_v8, %v91_v7 }
  0x95   :  { %v117_v10 = vmax.f32 %v115_v9, 0.0 }
  0x97   :  { %153 = vmatpush.msra.mxu1 %v117_v10  ;;  %206 = vmatpush.msra.mxu3 %v117_v10 }
  0x98   :  { %204 = vmatmul.msk.f32.vlgmr.msra.gmra.mxu3 %vm93_vm0, %v119_v11  ;;  %203 = vmatmul.msk.f32.vlgmr.msra.gmra.mxu1 %vm93_vm0, %v118_v12 }
 0x115   :  { %v155_v13 = vpop.f32.mrf.mxu1 }
 0x116   :  { %v156_v15 = vadd.f32 %v155_v13, %v125_v14 }
 0x118   :  { %v161_v19 = vmax.f32 %v156_v15, 0.0 }
 0x11b   :  { %v158_v17 = vpop.f32.mrf.mxu3 }
 0x11c   :  { %v159_v18 = vadd.f32 %v158_v17, %v130_v16 }
 0x11e   :  { %v162_v20 = vmax.f32 %v159_v18, 0.0 }
 0x120   :  { %188 = vmatpush.msra.mxu2 %v162_v20 }
 0x122   :  { %189 = vmatpush.msra.mxu2 %v161_v19 }
 0x123   :  { %205 = vmatmul.msk.f32.vlgmr.msra.gmra.mxu2 %vm170_vm1, %v163_v21 }
 0x1a6   :  { %v191_v23 = vpop.f32.mrf.mxu2 }
 0x1a7   :  { %v192_v24 = vadd.f32 %v191_v23, %v168_v22 }
 0x1a9   :  { %194 = vst [vmem:[%s399_s7] sm:$0xff] %v192_v24 }
 0x1aa   :  { %199 = vsyncpa [#allocation3], 1 }
 0x1ab   :  { %200 = vsyncpa [#allocation5], 1 }
 0x1ac   :  { %201 = vsyncpa [#allocation8], 1 }

</bundles_post_ra>
